<compile_context>
chip_gen: v7x
topology: tpu7x:2x2x1
jax: 0.10.0
libtpu: 0.0.40
codegen_flags: <defaults>
</compile_context>

<pallas_src>
import functools

import jax
import jax.numpy as jnp
from jax import lax
from jax.experimental import pallas as pl
from jax.experimental.pallas import tpu as pltpu


def _round_up(a: int, m: int) -> int:
    return (a + m - 1) // m * m


def rocket_kernel(x_ref, w_ref, wcls_ref, b_ref, out_ref, m_ref, s_ref, *,
                  t_out, inv_t_out, num_k_chunks, has_tail):
    """Grid = (b_blk, t_blk); t (time-tile reduction) is the inner, 'arbitrary' axis.

    x_ref    : (b_tile, t_tile, CL_pad)          im2col'd input window (compute dtype)
    w_ref    : (num_k, CL_pad, k_tile)           unfolded ROCKET weights, VMEM resident
    wcls_ref : (num_k, 2*k_tile, NC_pad) f32     [wmax ; wmean] per K chunk, resident
    b_ref    : (1, NC_pad) f32                   classifier bias, resident
    out_ref  : (b_tile, NC_pad) f32              logits (resident across the t sweep)
    m_ref    : (num_k, b_tile, k_tile) f32       running max scratch
    s_ref    : (num_k, b_tile, k_tile) f32       running sum scratch
    """
    t_id = pl.program_id(1)
    n_t = pl.num_programs(1)

    b_tile, t_tile, cl_pad = x_ref.shape
    k_tile = w_ref.shape[2]

    # Start of this B block's T sweep: seed logits with the bias, reset pooling state.
    @pl.when(t_id == 0)
    def _():
        out_ref[...] = jnp.broadcast_to(b_ref[...], out_ref.shape)
        m_ref[...] = jnp.full(m_ref.shape, -jnp.inf, dtype=m_ref.dtype)
        s_ref[...] = jnp.zeros(s_ref.shape, dtype=s_ref.dtype)

    # Dense MXU conv LHS: fold (b, t) into one sublane-major axis (free reshape).
    lhs = x_ref[...].reshape(b_tile * t_tile, cl_pad)

    def for_each_chunk(body):
        if num_k_chunks <= 2:
            for kc in range(num_k_chunks):       # static unroll for tiny K
                body(kc)
        else:
            @pl.loop(0, num_k_chunks)            # bounded temporaries for large K
            def _(kc):
                body(kc)

    def update_chunk(kc, masked):
        conv = jnp.dot(lhs, w_ref[kc], preferred_element_type=jnp.float32)
        conv = conv.reshape(b_tile, t_tile, k_tile)
        # Mean path: padded time rows of x are exact zeros -> never needs a mask.
        s_ref[kc] = s_ref[kc] + jnp.sum(conv, axis=1)
        if masked:
            # Only the last T tile has a padded tail; mask it out of the max.
            t_idx = t_id * t_tile + lax.broadcasted_iota(jnp.int32, (1, t_tile, 1), 1)
            conv = jnp.where(t_idx < t_out, conv, -jnp.inf)
        m_ref[kc] = jnp.maximum(m_ref[kc], jnp.max(conv, axis=1))

    if has_tail:
        @pl.when(t_id < n_t - 1)                 # interior tiles: no masking VALU work
        def _():
            for_each_chunk(lambda kc: update_chunk(kc, masked=False))

        @pl.when(t_id == n_t - 1)                # last tile: masked max path only
        def _():
            for_each_chunk(lambda kc: update_chunk(kc, masked=True))
    else:
        for_each_chunk(lambda kc: update_chunk(kc, masked=False))

    # End of the T sweep: fold [max | mean] features into the logits with a single
    # 2*k_tile-deep matmul per chunk (fills the 256-wide MXU on v6e/v7x).
    @pl.when(t_id == n_t - 1)
    def _():
        def finalize_chunk(kc):
            feat = jnp.concatenate([m_ref[kc], s_ref[kc] * inv_t_out], axis=-1)
            out_ref[...] += jnp.dot(feat, wcls_ref[kc],
                                    preferred_element_type=jnp.float32)
        for_each_chunk(finalize_chunk)


def differentiable_rocket_forward(x, kernels, cls_w, cls_b, *,
                                  k_tile=256, t_tile=None, b_tile=None,
                                  compute_dtype=jnp.bfloat16,
                                  vmem_cap_bytes=48 * 1024 * 1024):
    """x:(B,C,T), kernels:(K,C,L), cls_w:(NC,2K), cls_b:(NC,) -> (B,NC) f32 logits.

    compute_dtype=bfloat16 (default) halves x DMA/VMEM and hits the bf16 MXU rate on
    v6e/v7x; accumulation is f32 throughout.  Pass float32 for bit-tight agreement
    with the f32 PyTorch module.  On v5e use k_tile=128 (matches its 128x128 MXUs).
    """
    B, C, T = x.shape
    K, _, L = kernels.shape
    NC = cls_w.shape[0]
    T_out = T - L + 1
    assert T_out >= 1

    bf16 = jnp.dtype(compute_dtype) == jnp.dtype(jnp.bfloat16)

    # ---- one-time wrapper-side im2col: fold the L conv taps into the contraction ----
    cols = jnp.stack([x[:, :, l:l + T_out] for l in range(L)], axis=2)      # (B,C,L,T_out)
    x_unf = jnp.transpose(cols, (0, 3, 1, 2)).reshape(B, T_out, C * L)      # (B,T_out,C*L)
    w_unf = kernels.reshape(K, C * L).T                                     # (C*L, K)

    # ---- padding / tiling ----
    cl = C * L
    CL_pad = _round_up(cl, 16 if bf16 else 8)
    # TODO(synk): CL sits on the lane axis and pads to 128 lanes inside VMEM/vregs; a
    # (B, CL, T) sublane-major layout would recover that waste at the cost of per-batch
    # 2-D dots.  Tile sizes below already account for the 128-lane footprint.
    k_tile = max(128, _round_up(k_tile, 128))
    K_pad = _round_up(K, k_tile)
    num_k = K_pad // k_tile
    NC_pad = _round_up(NC, 128)

    if t_tile is None:
        t_tile = min(512, _round_up(T_out, 16))
    t_tile = _round_up(t_tile, 16)
    T_pad = _round_up(T_out, t_tile)

    if b_tile is None:
        # With the K loop inside the kernel each grid step already carries the full
        # 2*B_tile*t_tile*CL*K flops, so 8 sublanes suffice; B >= 16 then also yields
        # >=2 "parallel" B blocks for v7x megacore.
        b_tile = 8
    b_tile = max(8, _round_up(b_tile, 8))
    B_pad = _round_up(B, b_tile)

    # ---- padded operands ----
    x_p = jnp.zeros((B_pad, T_pad, CL_pad), compute_dtype
                    ).at[:B, :T_out, :cl].set(x_unf.astype(compute_dtype))
    w_p = jnp.zeros((CL_pad, K_pad), compute_dtype
                    ).at[:cl, :K].set(w_unf.astype(compute_dtype))
    w_p = w_p.reshape(CL_pad, num_k, k_tile).transpose(1, 0, 2)             # (num_k,CL,kt)

    # Even columns of cls_w act on max features, odd columns on mean features; stack
    # them so the finalize is a single 2*k_tile-deep contraction per K chunk.
    wmax = jnp.zeros((K_pad, NC_pad), jnp.float32).at[:K, :NC].set(cls_w[:, 0::2].T)
    wmean = jnp.zeros((K_pad, NC_pad), jnp.float32).at[:K, :NC].set(cls_w[:, 1::2].T)
    wcls_p = jnp.concatenate([wmax.reshape(num_k, k_tile, NC_pad),
                              wmean.reshape(num_k, k_tile, NC_pad)], axis=1)
    b_p = jnp.zeros((1, NC_pad), jnp.float32).at[0, :NC].set(cls_b)

    grid = (B_pad // b_tile, T_pad // t_tile)
    has_tail = (T_pad != T_out)

    kernel = functools.partial(rocket_kernel, t_out=T_out, inv_t_out=1.0 / T_out,
                               num_k_chunks=num_k, has_tail=has_tail)

    # VMEM footprint (x lane padding to 128 included) -> scoped limit, capped so it is
    # valid on v7x's 64 MiB VMEM as well as v5e/v6e's 128 MiB.
    dbytes = jnp.dtype(compute_dtype).itemsize
    est = (2 * b_tile * t_tile * _round_up(CL_pad, 128) * dbytes       # x (double buffered)
           + b_tile * t_tile * k_tile * 4                              # per-chunk conv temp
           + num_k * CL_pad * k_tile * dbytes                          # conv weights (resident)
           + num_k * 2 * k_tile * NC_pad * 4                           # classifier weights
           + 2 * num_k * b_tile * k_tile * 4                           # max / sum scratch
           + 2 * b_tile * NC_pad * 4)                                  # logits block
    vmem_limit = int(min(max(est + (8 << 20), 32 << 20), vmem_cap_bytes))

    out_p = pl.pallas_call(
        kernel,
        out_shape=jax.ShapeDtypeStruct((B_pad, NC_pad), jnp.float32),
        grid_spec=pltpu.PrefetchScalarGridSpec(
            num_scalar_prefetch=0,
            grid=grid,
            in_specs=[
                # x is the only stream that varies with the grid (fetched once per tile).
                pl.BlockSpec((b_tile, t_tile, CL_pad), lambda b, t: (b, t, 0)),
                # Everything else is small and fully VMEM-resident: constant index_map
                # -> DMA'd once, never re-fetched (fixes the K_pad/k_tile x refetch of x).
                pl.BlockSpec((num_k, CL_pad, k_tile), lambda b, t: (0, 0, 0)),
                pl.BlockSpec((num_k, 2 * k_tile, NC_pad), lambda b, t: (0, 0, 0)),
                pl.BlockSpec((1, NC_pad), lambda b, t: (0, 0)),
            ],
            out_specs=pl.BlockSpec((b_tile, NC_pad), lambda b, t: (b, 0)),
            scratch_shapes=[
                pltpu.VMEM((num_k, b_tile, k_tile), jnp.float32),   # running max
                pltpu.VMEM((num_k, b_tile, k_tile), jnp.float32),   # running sum
            ],
        ),
        compiler_params=pltpu.CompilerParams(
            # B blocks shard across v7x's two TensorCores; the T sweep accumulates into
            # resident scratch/output, so it stays "arbitrary".
            dimension_semantics=("parallel", "arbitrary"),
            vmem_limit_bytes=vmem_limit,
        ),
    )(x_p, w_p, wcls_p, b_p)

    return out_p[:B, :NC]


def reference_forward(x, kernels, cls_w, cls_b):
    """Pure-JAX reference mirroring the PyTorch module (full-precision conv/matmul)."""
    conv = lax.conv_general_dilated(
        x, kernels, window_strides=(1,), padding="VALID",
        dimension_numbers=("NCH", "OIH", "NCH"),
        precision=lax.Precision.HIGHEST)                       # (B, K, T_out)
    mx = jnp.max(conv, axis=-1)
    mn = jnp.mean(conv, axis=-1)
    feats = jnp.stack([mx, mn], axis=-1).reshape(x.shape[0], -1)   # [max0, mean0, ...]
    return jnp.dot(feats, cls_w.T, precision=lax.Precision.HIGHEST) + cls_b


if __name__ == "__main__":
    # Small deterministic setup consistent with the module.
    B, C, T = 2, 4, 16          # batch, input channels, series length
    K, L = 8, 9                 # number of ROCKET kernels, kernel length
    NC = 3                      # number of classes
    # TODO(synk): real ROCKET uses per-kernel lengths/dilations/biases; this uniform
    # im2col layout assumes a single fixed kernel length L.

    key = jax.random.PRNGKey(0)
    kx, kw, kcw = jax.random.split(key, 3)
    x = jax.random.normal(kx, (B, C, T), dtype=jnp.float32)
    kernels = jax.random.normal(kw, (K, C, L), dtype=jnp.float32)
    cls_w = jax.random.normal(kcw, (NC, 2 * K), dtype=jnp.float32) * 0.1
    cls_b = jax.random.normal(jax.random.PRNGKey(1), (NC,), dtype=jnp.float32) * 0.1

    ref = reference_forward(x, kernels, cls_w, cls_b)

    # f32 compute path: matches the f32 PyTorch module.
    out_f32 = jax.block_until_ready(
        differentiable_rocket_forward(x, kernels, cls_w, cls_b,
                                      compute_dtype=jnp.float32))
    assert out_f32.shape == (B, NC)
    assert jnp.allclose(out_f32, ref, rtol=3e-2, atol=3e-2), (out_f32, ref)

    # Default (bf16 conv inputs/weights, f32 accumulation) path: looser tolerance.
    out_bf16 = jax.block_until_ready(
        differentiable_rocket_forward(x, kernels, cls_w, cls_b))
    assert out_bf16.shape == (B, NC)
    assert jnp.allclose(out_bf16, ref, rtol=1.5e-1, atol=1.5e-1), (out_bf16, ref)

    print("KERNEL_OK")
</pallas_src>

<mosaic_0001>
module attributes {stable_mosaic.version = 11 : i64} {
  func.func @rocket_kernel(%arg0: i32, %arg1: i32, %arg2: memref<8x16x40xf32, #tpu.memory_space<vmem>>, %arg3: memref<1x40x256xf32, #tpu.memory_space<vmem>>, %arg4: memref<1x512x128xf32, #tpu.memory_space<vmem>>, %arg5: memref<1x128xf32, #tpu.memory_space<vmem>>, %arg6: memref<8x128xf32, #tpu.memory_space<vmem>>, %arg7: memref<1x8x256xf32, #tpu.memory_space<vmem>>, %arg8: memref<1x8x256xf32, #tpu.memory_space<vmem>>) attributes {dimension_semantics = [#tpu.dimension_semantics<parallel>, #tpu.dimension_semantics<arbitrary>], iteration_bounds = array<i64: 1, 1>, scalar_prefetch = 0 : i64, scratch_operands = 2 : i64, tpu.core_type = #tpu.core_type<tc>, window_params = [{transform_indices = @transform_0, window_bounds = array<i64: 8, 16, 40>}, {pipeline_mode = #tpu.pipeline_mode<synchronous>, transform_indices = @transform_1, window_bounds = array<i64: 1, 40, 256>}, {pipeline_mode = #tpu.pipeline_mode<synchronous>, transform_indices = @transform_2, window_bounds = array<i64: 1, 512, 128>}, {pipeline_mode = #tpu.pipeline_mode<synchronous>, transform_indices = @transform_3, window_bounds = array<i64: 1, 128>}, {transform_indices = @transform_4, window_bounds = array<i64: 8, 128>}]} {
    %c0_i32 = arith.constant 0 : i32
    %0 = arith.cmpi eq, %arg1, %c0_i32 : i32
    %1 = arith.extui %0 : i1 to i32
    %c0_i32_0 = arith.constant 0 : i32
    %2 = arith.cmpi ne, %1, %c0_i32_0 : i32
    scf.if %2 {
      %c0_9 = arith.constant 0 : index
      %c0_10 = arith.constant 0 : index
      %14 = vector.load %arg5[%c0_9, %c0_10] : memref<1x128xf32, #tpu.memory_space<vmem>>, vector<1x128xf32>
      %15 = vector.shape_cast %14 : vector<1x128xf32> to vector<1x128xf32>
      %16 = vector.broadcast %15 : vector<1x128xf32> to vector<8x128xf32>
      %c0_11 = arith.constant 0 : index
      %c0_12 = arith.constant 0 : index
      %17 = vector.load %arg6[%c0_11, %c0_12] : memref<8x128xf32, #tpu.memory_space<vmem>>, vector<8x128xf32>
      tpu.vector_store %arg6[%c0_11, %c0_12], %16 {strides = array<i32>} : memref<8x128xf32, #tpu.memory_space<vmem>>, vector<8x128xf32>,
      %cst = arith.constant 0xFF800000 : f32
      %18 = vector.broadcast %cst : f32 to vector<1x8x256xf32>
      %c0_13 = arith.constant 0 : index
      %c0_14 = arith.constant 0 : index
      %c0_15 = arith.constant 0 : index
      %19 = vector.load %arg7[%c0_13, %c0_14, %c0_15] : memref<1x8x256xf32, #tpu.memory_space<vmem>>, vector<1x8x256xf32>
      tpu.vector_store %arg7[%c0_13, %c0_14, %c0_15], %18 {strides = array<i32>} : memref<1x8x256xf32, #tpu.memory_space<vmem>>, vector<1x8x256xf32>,
      %cst_16 = arith.constant 0.000000e+00 : f32
      %20 = vector.broadcast %cst_16 : f32 to vector<1x8x256xf32>
      %c0_17 = arith.constant 0 : index
      %c0_18 = arith.constant 0 : index
      %c0_19 = arith.constant 0 : index
      %21 = vector.load %arg8[%c0_17, %c0_18, %c0_19] : memref<1x8x256xf32, #tpu.memory_space<vmem>>, vector<1x8x256xf32>
      tpu.vector_store %arg8[%c0_17, %c0_18, %c0_19], %20 {strides = array<i32>} : memref<1x8x256xf32, #tpu.memory_space<vmem>>, vector<1x8x256xf32>,
    } else {
    }
    %c0 = arith.constant 0 : index
    %c0_1 = arith.constant 0 : index
    %c0_2 = arith.constant 0 : index
    %3 = vector.load %arg2[%c0, %c0_1, %c0_2] : memref<8x16x40xf32, #tpu.memory_space<vmem>>, vector<8x16x40xf32>
    %4 = vector.shape_cast %3 : vector<8x16x40xf32> to vector<128x40xf32>
    %c0_i32_3 = arith.constant 0 : i32
    %5 = arith.cmpi slt, %arg1, %c0_i32_3 : i32
    %6 = arith.extui %5 : i1 to i32
    %c0_i32_4 = arith.constant 0 : i32
    %7 = arith.cmpi ne, %6, %c0_i32_4 : i32
    scf.if %7 {
      %c0_9 = arith.constant 0 : index
      %c0_10 = arith.constant 0 : index
      %c0_11 = arith.constant 0 : index
      %14 = vector.load %arg3[%c0_9, %c0_10, %c0_11] : memref<1x40x256xf32, #tpu.memory_space<vmem>>, vector<1x40x256xf32>
      %15 = vector.shape_cast %14 : vector<1x40x256xf32> to vector<40x256xf32>
      %cst = arith.constant dense<0.000000e+00> : vector<128x256xf32>
      %16 = tpu.matmul %4, %15, %cst {dimension_numbers = #tpu.dot_dimension_numbers<[1], [0], [0], [1], [0, 0, 1, 1], [], []>} : vector<128x40xf32>, vector<40x256xf32>, vector<128x256xf32> -> vector<128x256xf32>
      %17 = vector.shape_cast %16 : vector<128x256xf32> to vector<8x16x256xf32>
      %c0_12 = arith.constant 0 : index
      %c0_13 = arith.constant 0 : index
      %c0_14 = arith.constant 0 : index
      %18 = vector.load %arg8[%c0_12, %c0_13, %c0_14] : memref<1x8x256xf32, #tpu.memory_space<vmem>>, vector<1x8x256xf32>
      %19 = vector.shape_cast %18 : vector<1x8x256xf32> to vector<8x256xf32>
      %cst_15 = arith.constant dense<0.000000e+00> : vector<8x256xf32>
      %20 = vector.multi_reduction <add>, %17, %cst_15 [1] : vector<8x16x256xf32> to vector<8x256xf32>
      %21 = arith.addf %19, %20 : vector<8x256xf32>
      %c0_16 = arith.constant 0 : index
      %c0_17 = arith.constant 0 : index
      %c0_18 = arith.constant 0 : index
      %22 = vector.load %arg8[%c0_16, %c0_17, %c0_18] : memref<1x8x256xf32, #tpu.memory_space<vmem>>, vector<1x8x256xf32>
      %23 = vector.shape_cast %22 : vector<1x8x256xf32> to vector<8x256xf32>
      %24 = vector.shape_cast %21 : vector<8x256xf32> to vector<1x8x256xf32>
      tpu.vector_store %arg8[%c0_16, %c0_17, %c0_18], %24 {strides = array<i32>} : memref<1x8x256xf32, #tpu.memory_space<vmem>>, vector<1x8x256xf32>,
      %c0_19 = arith.constant 0 : index
      %c0_20 = arith.constant 0 : index
      %c0_21 = arith.constant 0 : index
      %25 = vector.load %arg7[%c0_19, %c0_20, %c0_21] : memref<1x8x256xf32, #tpu.memory_space<vmem>>, vector<1x8x256xf32>
      %26 = vector.shape_cast %25 : vector<1x8x256xf32> to vector<8x256xf32>
      %cst_22 = arith.constant dense<0xFF800000> : vector<8x256xf32>
      %27 = vector.multi_reduction <maximumf>, %17, %cst_22 [1] : vector<8x16x256xf32> to vector<8x256xf32>
      %28 = arith.maximumf %26, %27 : vector<8x256xf32>
      %c0_23 = arith.constant 0 : index
      %c0_24 = arith.constant 0 : index
      %c0_25 = arith.constant 0 : index
      %29 = vector.load %arg7[%c0_23, %c0_24, %c0_25] : memref<1x8x256xf32, #tpu.memory_space<vmem>>, vector<1x8x256xf32>
      %30 = vector.shape_cast %29 : vector<1x8x256xf32> to vector<8x256xf32>
      %31 = vector.shape_cast %28 : vector<8x256xf32> to vector<1x8x256xf32>
      tpu.vector_store %arg7[%c0_23, %c0_24, %c0_25], %31 {strides = array<i32>} : memref<1x8x256xf32, #tpu.memory_space<vmem>>, vector<1x8x256xf32>,
    } else {
    }
    %c0_i32_5 = arith.constant 0 : i32
    %8 = arith.cmpi eq, %arg1, %c0_i32_5 : i32
    %9 = arith.extui %8 : i1 to i32
    %c0_i32_6 = arith.constant 0 : i32
    %10 = arith.cmpi ne, %9, %c0_i32_6 : i32
    scf.if %10 {
      %c0_9 = arith.constant 0 : index
      %c0_10 = arith.constant 0 : index
      %c0_11 = arith.constant 0 : index
      %14 = vector.load %arg3[%c0_9, %c0_10, %c0_11] : memref<1x40x256xf32, #tpu.memory_space<vmem>>, vector<1x40x256xf32>
      %15 = vector.shape_cast %14 : vector<1x40x256xf32> to vector<40x256xf32>
      %cst = arith.constant dense<0.000000e+00> : vector<128x256xf32>
      %16 = tpu.matmul %4, %15, %cst {dimension_numbers = #tpu.dot_dimension_numbers<[1], [0], [0], [1], [0, 0, 1, 1], [], []>} : vector<128x40xf32>, vector<40x256xf32>, vector<128x256xf32> -> vector<128x256xf32>
      %17 = vector.shape_cast %16 : vector<128x256xf32> to vector<8x16x256xf32>
      %c0_12 = arith.constant 0 : index
      %c0_13 = arith.constant 0 : index
      %c0_14 = arith.constant 0 : index
      %18 = vector.load %arg8[%c0_12, %c0_13, %c0_14] : memref<1x8x256xf32, #tpu.memory_space<vmem>>, vector<1x8x256xf32>
      %19 = vector.shape_cast %18 : vector<1x8x256xf32> to vector<8x256xf32>
      %cst_15 = arith.constant dense<0.000000e+00> : vector<8x256xf32>
      %20 = vector.multi_reduction <add>, %17, %cst_15 [1] : vector<8x16x256xf32> to vector<8x256xf32>
      %21 = arith.addf %19, %20 : vector<8x256xf32>
      %c0_16 = arith.constant 0 : index
      %c0_17 = arith.constant 0 : index
      %c0_18 = arith.constant 0 : index
      %22 = vector.load %arg8[%c0_16, %c0_17, %c0_18] : memref<1x8x256xf32, #tpu.memory_space<vmem>>, vector<1x8x256xf32>
      %23 = vector.shape_cast %22 : vector<1x8x256xf32> to vector<8x256xf32>
      %24 = vector.shape_cast %21 : vector<8x256xf32> to vector<1x8x256xf32>
      tpu.vector_store %arg8[%c0_16, %c0_17, %c0_18], %24 {strides = array<i32>} : memref<1x8x256xf32, #tpu.memory_space<vmem>>, vector<1x8x256xf32>,
      %c16_i32 = arith.constant 16 : i32
      %25 = arith.muli %arg1, %c16_i32 : i32
      %26 = tpu.iota {dimensions = array<i32: 1>} : vector<1x16x1xi32>
      %27 = vector.broadcast %25 : i32 to vector<1x16x1xi32>
      %28 = arith.addi %27, %26 : vector<1x16x1xi32>
      %c8_i32 = arith.constant 8 : i32
      %29 = vector.broadcast %c8_i32 : i32 to vector<1x16x1xi32>
      %30 = arith.cmpi slt, %28, %29 : vector<1x16x1xi32>
      %cst_19 = arith.constant 0xFF800000 : f32
      %31 = vector.shape_cast %30 : vector<1x16x1xi1> to vector<1x16x1xi1>
      %32 = vector.broadcast %31 : vector<1x16x1xi1> to vector<8x16x256xi1>
      %33 = vector.broadcast %cst_19 : f32 to vector<8x16x256xf32>
      %34 = arith.select %32, %17, %33 : vector<8x16x256xi1>, vector<8x16x256xf32>
      %c0_20 = arith.constant 0 : index
      %c0_21 = arith.constant 0 : index
      %c0_22 = arith.constant 0 : index
      %35 = vector.load %arg7[%c0_20, %c0_21, %c0_22] : memref<1x8x256xf32, #tpu.memory_space<vmem>>, vector<1x8x256xf32>
      %36 = vector.shape_cast %35 : vector<1x8x256xf32> to vector<8x256xf32>
      %cst_23 = arith.constant dense<0xFF800000> : vector<8x256xf32>
      %37 = vector.multi_reduction <maximumf>, %34, %cst_23 [1] : vector<8x16x256xf32> to vector<8x256xf32>
      %38 = arith.maximumf %36, %37 : vector<8x256xf32>
      %c0_24 = arith.constant 0 : index
      %c0_25 = arith.constant 0 : index
      %c0_26 = arith.constant 0 : index
      %39 = vector.load %arg7[%c0_24, %c0_25, %c0_26] : memref<1x8x256xf32, #tpu.memory_space<vmem>>, vector<1x8x256xf32>
      %40 = vector.shape_cast %39 : vector<1x8x256xf32> to vector<8x256xf32>
      %41 = vector.shape_cast %38 : vector<8x256xf32> to vector<1x8x256xf32>
      tpu.vector_store %arg7[%c0_24, %c0_25, %c0_26], %41 {strides = array<i32>} : memref<1x8x256xf32, #tpu.memory_space<vmem>>, vector<1x8x256xf32>,
    } else {
    }
    %c0_i32_7 = arith.constant 0 : i32
    %11 = arith.cmpi eq, %arg1, %c0_i32_7 : i32
    %12 = arith.extui %11 : i1 to i32
    %c0_i32_8 = arith.constant 0 : i32
    %13 = arith.cmpi ne, %12, %c0_i32_8 : i32
    scf.if %13 {
      %c0_9 = arith.constant 0 : index
      %c0_10 = arith.constant 0 : index
      %c0_11 = arith.constant 0 : index
      %14 = vector.load %arg7[%c0_9, %c0_10, %c0_11] : memref<1x8x256xf32, #tpu.memory_space<vmem>>, vector<1x8x256xf32>
      %15 = vector.shape_cast %14 : vector<1x8x256xf32> to vector<8x256xf32>
      %c0_12 = arith.constant 0 : index
      %c0_13 = arith.constant 0 : index
      %c0_14 = arith.constant 0 : index
      %16 = vector.load %arg8[%c0_12, %c0_13, %c0_14] : memref<1x8x256xf32, #tpu.memory_space<vmem>>, vector<1x8x256xf32>
      %17 = vector.shape_cast %16 : vector<1x8x256xf32> to vector<8x256xf32>
      %cst = arith.constant 1.250000e-01 : f32
      %18 = vector.broadcast %cst : f32 to vector<8x256xf32>
      %19 = arith.mulf %17, %18 : vector<8x256xf32>
      %20 = tpu.concatenate %15, %19 in 1 : vector<8x256xf32>, vector<8x256xf32> -> vector<8x512xf32>
      %c0_15 = arith.constant 0 : index
      %c0_16 = arith.constant 0 : index
      %21 = vector.load %arg6[%c0_15, %c0_16] : memref<8x128xf32, #tpu.memory_space<vmem>>, vector<8x128xf32>
      %c0_17 = arith.constant 0 : index
      %c0_18 = arith.constant 0 : index
      %c0_19 = arith.constant 0 : index
      %22 = vector.load %arg4[%c0_17, %c0_18, %c0_19] : memref<1x512x128xf32, #tpu.memory_space<vmem>>, vector<1x512x128xf32>
      %23 = vector.shape_cast %22 : vector<1x512x128xf32> to vector<512x128xf32>
      %cst_20 = arith.constant dense<0.000000e+00> : vector<8x128xf32>
      %24 = tpu.matmul %20, %23, %cst_20 {dimension_numbers = #tpu.dot_dimension_numbers<[1], [0], [0], [1], [0, 0, 1, 1], [], []>} : vector<8x512xf32>, vector<512x128xf32>, vector<8x128xf32> -> vector<8x128xf32>
      %25 = arith.addf %21, %24 : vector<8x128xf32>
      %c0_21 = arith.constant 0 : index
      %c0_22 = arith.constant 0 : index
      %26 = vector.load %arg6[%c0_21, %c0_22] : memref<8x128xf32, #tpu.memory_space<vmem>>, vector<8x128xf32>
      tpu.vector_store %arg6[%c0_21, %c0_22], %25 {strides = array<i32>} : memref<8x128xf32, #tpu.memory_space<vmem>>, vector<8x128xf32>,
    } else {
    }
    return
  }
  func.func @transform_0(%arg0: i32, %arg1: i32) -> (i32, i32, i32) {
    %c0_i32 = arith.constant 0 : i32
    %c0_i32_0 = arith.constant 0 : i32
    return %arg0, %arg1, %c0_i32 : i32, i32, i32
  }
  func.func @transform_1(%arg0: i32, %arg1: i32) -> (i32, i32, i32) {
    %c0_i32 = arith.constant 0 : i32
    %c0_i32_0 = arith.constant 0 : i32
    %c0_i32_1 = arith.constant 0 : i32
    %c0_i32_2 = arith.constant 0 : i32
    return %c0_i32, %c0_i32_0, %c0_i32_1 : i32, i32, i32
  }
  func.func @transform_2(%arg0: i32, %arg1: i32) -> (i32, i32, i32) {
    %c0_i32 = arith.constant 0 : i32
    %c0_i32_0 = arith.constant 0 : i32
    %c0_i32_1 = arith.constant 0 : i32
    %c0_i32_2 = arith.constant 0 : i32
    return %c0_i32, %c0_i32_0, %c0_i32_1 : i32, i32, i32
  }
  func.func @transform_3(%arg0: i32, %arg1: i32) -> (i32, i32) {
    %c0_i32 = arith.constant 0 : i32
    %c0_i32_0 = arith.constant 0 : i32
    %c0_i32_1 = arith.constant 0 : i32
    return %c0_i32, %c0_i32_0 : i32, i32
  }
  func.func @transform_4(%arg0: i32, %arg1: i32) -> (i32, i32) {
    %c0_i32 = arith.constant 0 : i32
    %c0_i32_0 = arith.constant 0 : i32
    return %arg0, %c0_i32 : i32, i32
  }
}

</mosaic_0001>

<bundles_post_ra>
// kernel: tpu_custom_call.1
= control target key start
LH: loop header
LB: loop body
LE: loop exit
PB: predicated region body
PF: predicated region fallthrough
CT: control target
= control target key end

     0   :  { %9 = vsyncpa [#allocation5], 0  ;;  %s1849_s0 = inlined_call_operand.hbm [shape: f32[8,16,40], index: 0, kind: input, shape index: {}]   ;;  %s1850_s1 = inlined_call_operand.hbm [shape: f32[1,40,256], index: 1, kind: input, shape index: {}]   ;;  %s1851_s2 = inlined_call_operand.hbm [shape: f32[1,512,128], index: 2, kind: input, shape index: {}]   ;;  %s1852_s3 = inlined_call_operand.vmem [shape: f32[1,128], index: 3, kind: input, shape index: {}]   ;;  %s1853_s4 = inlined_call_operand.hbm [shape: f32[8,128], index: 4, kind: output, shape index: {}]  }
   0x1   :  { %10 = vsyncpa [#allocation8], 0 }
   0x2   :  { %11 = vsyncpa [#allocation6], 0  ;;  %s1704_s15 = smov [#allocation7]   ;;  %s1610_s19 = scalar_lea.hbm %s1850_s1, 1280 }
   0x3   :  { %s29_s16 = sshll.u32 %s1704_s15, 4  ;;  %p1611_p0 = scmp.ne.s32.totalorder %s1850_s1, %s1610_s19  ;;  %s30_s16 = int_to_ptr.vmem [resolvable:$true] %s29_s16 }
   0x4   :  { %p1614_p1 = scmp.lt.u32.totalorder %s1610_s19, %s1850_s1 }
   0x6   :  { %p1616_p2 = pnand %p1614_p1, %p1611_p0 }
   0x8   :  { %1619 = shalt.err (!%p1616_p2)
}
   0x9   :  { %s1620_s24 = scalar_lea.vmem %s30_s16, 1280  ;;  %p1625_p4 = scmp.lt.s32.totalorder %s30_s16, %s30_s16 }
   0xa   :  { %p1621_p3 = scmp.ne.s32.totalorder %s30_s16, %s1620_s24  ;;  %p1626_p5 = scmp.lt.s32.totalorder %s1620_s24, %s1620_s24 }
   0xc   :  { %p1627_p6 = por %p1626_p5, %p1625_p4 }
   0xe   :  { %p1628_p7 = pnand %p1627_p6, %p1621_p3 }
  0x10   :  { %1631 = shalt.err (!%p1628_p7)
}
  0x11   :  { %s1705_s25 = smov 256   ;;  %s1706_s26 = smov 16  }
  0x12   :  { %35 = dma.hbm_to_vmem [thread:$0]  %s1850_s1, 1280, %s30_s16, [#allocation8], %s1705_s25, %s1705_s25, %s1706_s26  }
  0x13   :  { %s1707_s29 = smov [#allocation4]   ;;  %s1632_s7 = scalar_lea.hbm %s1849_s0, 2048 }
  0x14   :  { %s17_s30 = sshll.u32 %s1707_s29, 4  ;;  %p1633_p8 = scmp.ne.s32.totalorder %s1849_s0, %s1632_s7  ;;  %s18_s30 = int_to_ptr.vmem [resolvable:$true] %s17_s30 }
  0x15   :  { %p1636_p9 = scmp.lt.u32.totalorder %s1632_s7, %s1849_s0 }
  0x17   :  { %p1638_p10 = pnand %p1636_p9, %p1633_p8 }
  0x19   :  { %1641 = shalt.err (!%p1638_p10)
}
  0x1a   :  { %s1642_s12 = scalar_lea.vmem %s18_s30, 2048  ;;  %p1647_p12 = scmp.lt.s32.totalorder %s18_s30, %s18_s30 }
  0x1b   :  { %p1643_p11 = scmp.ne.s32.totalorder %s18_s30, %s1642_s12  ;;  %p1648_p13 = scmp.lt.s32.totalorder %s1642_s12, %s1642_s12 }
  0x1d   :  { %p1649_p0 = por %p1648_p13, %p1647_p12 }
  0x1f   :  { %p1650_p1 = pnand %p1649_p0, %p1643_p11 }
  0x21   :  { %1653 = shalt.err (!%p1650_p1)
}
  0x22   :  { %s1708_s1 = smov 128   ;;  %s1709_s13 = smov 8  }
  0x23   :  { %23 = dma.hbm_to_vmem [thread:$0]  %s1849_s0, 2048, %s18_s30, [#allocation5], %s1708_s1, %s1708_s1, %s1709_s13  }
  0x24   :  { %s1710_s16 = smov [#allocation9]   ;;  %s1654_s20 = scalar_lea.hbm %s1851_s2, 8192 }
  0x25   :  { %s41_s17 = sshll.u32 %s1710_s16, 4  ;;  %p1655_p2 = scmp.ne.s32.totalorder %s1851_s2, %s1654_s20  ;;  %s42_s17 = int_to_ptr.vmem [resolvable:$true] %s41_s17 }
  0x26   :  { %p1658_p3 = scmp.lt.u32.totalorder %s1654_s20, %s1851_s2 }
  0x28   :  { %p1660_p4 = pnand %p1658_p3, %p1655_p2 }
  0x2a   :  { %1663 = shalt.err (!%p1660_p4)
}
  0x2b   :  { %s1664_s25 = scalar_lea.vmem %s42_s17, 8192  ;;  %p1669_p6 = scmp.lt.s32.totalorder %s42_s17, %s42_s17 }
  0x2c   :  { %p1665_p5 = scmp.ne.s32.totalorder %s42_s17, %s1664_s25  ;;  %p1670_p7 = scmp.lt.s32.totalorder %s1664_s25, %s1664_s25 }
  0x2e   :  { %p1671_p8 = por %p1670_p7, %p1669_p6 }
  0x30   :  { %p1672_p9 = pnand %p1671_p8, %p1665_p5 }
  0x32   :  { %1675 = shalt.err (!%p1672_p9)
}
  0x33   :  { %47 = dma.hbm_to_vmem [thread:$0]  %s1851_s2, 8192, %s42_s17, [#allocation8], %s1708_s1, %s1708_s1, %s1709_s13  }
  0x34   :  { %1698 = dma.done.wait [#allocation5], 2048  }
  0x35   :  { %1699 = vsyncadd [#allocation5], 4294965248 }
  0x36   :  { %1700 = dma.done.wait [#allocation8], 9472  }
  0x37   :  { %1701 = vsyncadd [#allocation8], 4294957824  ;;  %v1711_v0 = vmov 0.0   ;;  %v626_v1 = vld [vmem:[#allocation7 + $0x8] sm:$0xff]  ;;  %v628_v2 = vld [vmem:[#allocation7 + $0x18] sm:$0xff]  ;;  %vm635_vm0 = vcmask 326656  }
  0x38   :  { %748 = vmatprep.mubr.f32.mxu0 %v1711_v0  ;;  %v625_v3 = vld [vmem:[#allocation7] sm:$0xff]  ;;  %v1529_v4 = vpack.c.bf16 %v628_v2, %v626_v1  ;;  %v627_v5 = vld [vmem:[#allocation7 + $0x10] sm:$0xff]  ;;  %v630_v6 = vld [vmem:[#allocation7 + $0x28] sm:$0xff]  ;;  %vm975_vm1 = vcmask 1041409   ;;  %vm977_vm2 = vcmask 1042434   ;;  %vm979_vm3 = vcmask 1043459  }
  0x39   :  { %v632_v7 = vld [vmem:[#allocation7 + $0x38] sm:$0xff]  ;;  %v1531_v8 = vpack.c.bf16 %v627_v5, %v625_v3  ;;  %v629_v10 = vld [vmem:[#allocation7 + $0x20] sm:$0xff]  ;;  %v631_v11 = vld [vmem:[#allocation7 + $0x30] sm:$0xff]  ;;  %vm981_vm4 = vcmask 1044484   ;;  %vm983_vm5 = vcmask 1045509   ;;  %vm985_vm6 = vcmask 1046534  }
  0x3a   :  { %v1533_v9 = vpack.c.bf16 %v632_v7, %v630_v6  ;;  %1530 = vmatprep.subr.bf16.mxu0 %v1529_v4  ;;  %v1535_v12 = vpack.c.bf16 %v631_v11, %v629_v10  ;;  %v634_v13 = vld [vmem:[#allocation7 + $0x48] sm:$0xff]  ;;  %v633_v14 = vld [vmem:[#allocation7 + $0x40] sm:$0xff]  ;;  %v77_v17 = vld [vmem:[#allocation4 + $0x10] sm:$0xff]  ;;  %vm987_vm7 = vcmask 1047559   ;;  %s1712_s28 = smov [#allocation10]  }
  0x3b   :  { %1532 = vmatpush1.bf16.msra.mxu0 %v1531_v8  ;;  %v75_v15 = vld [vmem:[#allocation4] sm:$0xff]  ;;  %v76_v16 = vld [vmem:[#allocation4 + $0x8] sm:$0xff]  ;;  %v78_v18 = vld [vmem:[#allocation4 + $0x18] sm:$0xff]  ;;  %s1416_s29 = sshll.u32 %s1712_s28, 4  ;;  %s1417_s29 = int_to_ptr.vmem [resolvable:$true] %s1416_s29 }
  0x3c   :  { %1534 = vmatprep.subr.bf16.mxu0 %v1533_v9  ;;  %v79_v19 = vld [vmem:[#allocation4 + $0x20] sm:$0xff]  ;;  %v80_v20 = vld [vmem:[#allocation4 + $0x28] sm:$0xff]  ;;  %v81_v21 = vld [vmem:[#allocation4 + $0x30] sm:$0xff]  ;;  %s1676_s30 = scalar_lea.vmem %s1417_s29, 128  ;;  %p1681_p11 = scmp.lt.s32.totalorder %s1417_s29, %s1417_s29 }
  0x3d   :  { %v82_v22 = vld [vmem:[#allocation4 + $0x38] sm:$0xff]  ;;  %v83_v23 = vld [vmem:[#allocation4 + $0x40] sm:$0xff]  ;;  %v84_v24 = vld [vmem:[#allocation4 + $0x48] sm:$0xff]  ;;  %p1677_p10 = scmp.ne.s32.totalorder %s1417_s29, %s1676_s30  ;;  %p1682_p12 = scmp.lt.s32.totalorder %s1676_s30, %s1676_s30 }
  0x3e   :  { %v85_v25 = vld [vmem:[#allocation4 + $0x50] sm:$0xff]  ;;  %v86_v26 = vld [vmem:[#allocation4 + $0x58] sm:$0xff]  ;;  %v87_v27 = vld [vmem:[#allocation4 + $0x60] sm:$0xff] }
  0x3f   :  { %1536 = vmatpush1.bf16.msra.mxu0 %v1535_v12  ;;  %v88_v28 = vld [vmem:[#allocation4 + $0x68] sm:$0xff]  ;;  %v89_v29 = vld [vmem:[#allocation4 + $0x70] sm:$0xff]  ;;  %v90_v30 = vld [vmem:[#allocation4 + $0x78] sm:$0xff]  ;;  %p1683_p13 = por %p1682_p12, %p1681_p11 }
  0x40   :  { %692 = vmatprep.subr.mxu0 %v634_v13  ;;  %v1220_v31 = vld [vmem:[#allocation9 + $0x80] sm:$0xff]  ;;  %v1221_v32 = vld [vmem:[#allocation9 + $0x88] sm:$0xff]  ;;  %v1222_v37 = vld [vmem:[#allocation9 + $0x90] sm:$0xff] }
  0x41   :  { %v1537_v33 = vpack.c.bf16 %v1221_v32, %v1220_v31  ;;  %v1204_v34 = vld [vmem:[#allocation9] sm:$0xff]  ;;  %v1205_v35 = vld [vmem:[#allocation9 + $0x8] sm:$0xff]  ;;  %v1223_v38 = vld [vmem:[#allocation9 + $0x98] sm:$0xff]  ;;  %p1684_p0 = pnand %p1683_p13, %p1677_p10 }
  0x42   :  { %v1539_v36 = vpack.c.bf16 %v1205_v35, %v1204_v34  ;;  %v1541_v39 = vpack.c.bf16 %v1223_v38, %v1222_v37  ;;  %v1206_v40 = vld [vmem:[#allocation9 + $0x10] sm:$0xff]  ;;  %v1207_v41 = vld [vmem:[#allocation9 + $0x18] sm:$0xff]  ;;  %v1224_v43 = vld [vmem:[#allocation9 + $0xa0] sm:$0xff] }
  0x43   :  { %693 = vmatpush1.msra.mxu0 %v633_v14  ;;  %1538 = vmatprep.subr.bf16.mxu1 %v1537_v33  ;;  %v1543_v42 = vpack.c.bf16 %v1207_v41, %v1206_v40  ;;  %v1225_v44 = vld [vmem:[#allocation9 + $0xa8] sm:$0xff]  ;;  %v1208_v46 = vld [vmem:[#allocation9 + $0x20] sm:$0xff]  ;;  %v1226_v49 = vld [vmem:[#allocation9 + $0xb0] sm:$0xff] }
  0x44   :  { %1443 = vmatmul.mubr.msk.f32.vlgmr.msra.gmra.mrb[0].mxu0 %vm635_vm0, %v75_v15  ;;  %1540 = vmatpush3.bf16.msra.mxu1 %v1539_v36  ;;  %v1545_v45 = vpack.c.bf16 %v1225_v44, %v1224_v43  ;;  %v1209_v47 = vld [vmem:[#allocation9 + $0x28] sm:$0xff]  ;;  %v1227_v50 = vld [vmem:[#allocation9 + $0xb8] sm:$0xff]  ;;  %v1210_v52 = vld [vmem:[#allocation9 + $0x30] sm:$0xff] }
  0x45   :  { %754 = vmatprep.mubr.f32.mxu0 %v1711_v0  ;;  %1542 = vmatprep.subr.bf16.mxu1 %v1541_v39  ;;  %v1547_v48 = vpack.c.bf16 %v1209_v47, %v1208_v46  ;;  %v1549_v51 = vpack.c.bf16 %v1227_v50, %v1226_v49  ;;  %v1211_v53 = vld [vmem:[#allocation9 + $0x38] sm:$0xff]  ;;  %v1228_v55 = vld [vmem:[#allocation9 + $0xc0] sm:$0xff]  ;;  %v1229_v56 = vld [vmem:[#allocation9 + $0xc8] sm:$0xff] }
  0x46   :  { %v1551_v54 = vpack.c.bf16 %v1211_v53, %v1210_v52  ;;  %v1553_v57 = vpack.c.bf16 %v1229_v56, %v1228_v55  ;;  %v1212_v58 = vld [vmem:[#allocation9 + $0x40] sm:$0xff]  ;;  %v1213_v59 = vld [vmem:[#allocation9 + $0x48] sm:$0xff]  ;;  %v1230_v61 = vld [vmem:[#allocation9 + $0xd0] sm:$0xff] }
  0x47   :  { %v1555_v60 = vpack.c.bf16 %v1213_v59, %v1212_v58  ;;  %v1231_v62 = vld [vmem:[#allocation9 + $0xd8] sm:$0xff]  ;;  %v1232_v3 = vld [vmem:[#allocation9 + $0xe0] sm:$0xff]  ;;  %v1233_v4 = vld [vmem:[#allocation9 + $0xe8] sm:$0xff] }
  0x48   :  { %1444 = vmatmul.mubr.msk.f32.gmra.mrb[2].mxu0 %vm635_vm0, %v76_v16  ;;  %1544 = vmatpush3.bf16.msra.mxu1 %v1543_v42  ;;  %v1557_v63 = vpack.c.bf16 %v1231_v62, %v1230_v61  ;;  %v1215_v1 = vld [vmem:[#allocation9 + $0x58] sm:$0xff]  ;;  %v1561_v5 = vpack.c.bf16 %v1233_v4, %v1232_v3  ;;  %v1216_v6 = vld [vmem:[#allocation9 + $0x60] sm:$0xff]  ;;  %v1217_v7 = vld [vmem:[#allocation9 + $0x68] sm:$0xff] }
  0x49   :  { %760 = vmatprep.mubr.f32.mxu0 %v1711_v0  ;;  %1546 = vmatprep.subr.bf16.mxu1 %v1545_v45  ;;  %v1563_v8 = vpack.c.bf16 %v1217_v7, %v1216_v6  ;;  %v1234_v9 = vld [vmem:[#allocation9 + $0xf0] sm:$0xff]  ;;  %v1235_v10 = vld [vmem:[#allocation9 + $0xf8] sm:$0xff]  ;;  %v1252_v15 = vld [vmem:[#allocation9 + $0x180] sm:$0xff] }
  0x4a   :  { %v1565_v11 = vpack.c.bf16 %v1235_v10, %v1234_v9  ;;  %v1218_v12 = vld [vmem:[#allocation9 + $0x70] sm:$0xff]  ;;  %v1219_v13 = vld [vmem:[#allocation9 + $0x78] sm:$0xff]  ;;  %v1253_v16 = vld [vmem:[#allocation9 + $0x188] sm:$0xff] }
  0x4b   :  { %v1567_v14 = vpack.c.bf16 %v1219_v13, %v1218_v12 }
  0x4c   :  { %1445 = vmatmul.mubr.msk.f32.gmra.mrb[4].mxu0 %vm635_vm0, %v77_v17  ;;  %1548 = vmatpush3.bf16.msra.mxu1 %v1547_v48  ;;  %v1569_v17 = vpack.c.bf16 %v1253_v16, %v1252_v15 }
  0x4d   :  { %766 = vmatprep.mubr.f32.mxu0 %v1711_v0  ;;  %1550 = vmatprep.subr.bf16.mxu1 %v1549_v51 }
  0x50   :  { %1446 = vmatmul.mubr.msk.f32.gmra.mrb[6].mxu0 %vm635_vm0, %v78_v18  ;;  %1552 = vmatpush3.bf16.msra.mxu1 %v1551_v54 }
  0x51   :  { %772 = vmatprep.mubr.f32.mxu0 %v1711_v0  ;;  %1554 = vmatprep.subr.bf16.mxu1 %v1553_v57 }
  0x54   :  { %1447 = vmatmul.mubr.msk.f32.gmra.mrb[8].mxu0 %vm635_vm0, %v79_v19  ;;  %1556 = vmatpush3.bf16.msra.mxu1 %v1555_v60 }
  0x55   :  { %778 = vmatprep.mubr.f32.mxu0 %v1711_v0  ;;  %1558 = vmatprep.subr.bf16.mxu1 %v1557_v63 }
  0x58   :  { %1448 = vmatmul.mubr.msk.f32.gmra.mrb[10].mxu0 %vm635_vm0, %v80_v20 }
  0x59   :  { %784 = vmatprep.mubr.f32.mxu0 %v1711_v0 }
  0x5c   :  { %1449 = vmatmul.mubr.msk.f32.gmra.mrb[12].mxu0 %vm635_vm0, %v81_v21 }
  0x5d   :  { %790 = vmatprep.mubr.f32.mxu0 %v1711_v0 }
  0x60   :  { %1450 = vmatmul.mubr.msk.f32.gmra.mrb[14].mxu0 %vm635_vm0, %v82_v22 }
  0x61   :  { %796 = vmatprep.mubr.f32.mxu0 %v1711_v0 }
  0x64   :  { %1451 = vmatmul.mubr.msk.f32.gmra.mrb[16].mxu0 %vm635_vm0, %v83_v23 }
  0x65   :  { %802 = vmatprep.mubr.f32.mxu0 %v1711_v0 }
  0x68   :  { %1452 = vmatmul.mubr.msk.f32.gmra.mrb[18].mxu0 %vm635_vm0, %v84_v24 }
  0x69   :  { %808 = vmatprep.mubr.f32.mxu0 %v1711_v0 }
  0x6c   :  { %1453 = vmatmul.mubr.msk.f32.gmra.mrb[20].mxu0 %vm635_vm0, %v85_v25 }
  0x6d   :  { %814 = vmatprep.mubr.f32.mxu0 %v1711_v0 }
  0x70   :  { %1454 = vmatmul.mubr.msk.f32.gmra.mrb[22].mxu0 %vm635_vm0, %v86_v26 }
  0x71   :  { %820 = vmatprep.mubr.f32.mxu0 %v1711_v0 }
  0x74   :  { %1455 = vmatmul.mubr.msk.f32.gmra.mrb[24].mxu0 %vm635_vm0, %v87_v27 }
  0x75   :  { %826 = vmatprep.mubr.f32.mxu0 %v1711_v0 }
  0x78   :  { %1456 = vmatmul.mubr.msk.f32.gmra.mrb[26].mxu0 %vm635_vm0, %v88_v28 }
  0x79   :  { %832 = vmatprep.mubr.f32.mxu0 %v1711_v0 }
  0x7c   :  { %1457 = vmatmul.mubr.msk.f32.gmra.mrb[28].mxu0 %vm635_vm0, %v89_v29 }
  0x7d   :  { %838 = vmatprep.mubr.f32.mxu0 %v1711_v0  ;;  %v1214_v0 = vld [vmem:[#allocation9 + $0x50] sm:$0xff] }
  0x7e   :  { %v1559_v2 = vpack.c.bf16 %v1215_v1, %v1214_v0 }
  0x80   :  { %1458 = vmatmul.mubr.msk.f32.gmra.mrb[30].mxu0 %vm635_vm0, %v90_v30  ;;  %1560 = vmatpush3.bf16.msra.mxu1 %v1559_v2 }
  0x81   :  { %1562 = vmatprep.subr.bf16.mxu1 %v1561_v5 }
  0x84   :  { %1564 = vmatpush3.bf16.msra.mxu1 %v1563_v8 }
  0x85   :  { %1566 = vmatprep.subr.bf16.mxu1 %v1565_v11 }
  0x88   :  { %1568 = vmatpush3.bf16.msra.mxu1 %v1567_v14 }
  0x89   :  { %1570 = vmatprep.subr.bf16.mxu1 %v1569_v17 }
 0x117   :  { %v750_v18 = vpop.f32.mrb[0].mxu0 }
 0x118   :  { %v1050_v19 = vrot.slane %v750_v18, 4  ;;  %v752_v20 = vpop.f32.mrb[1].mxu0 }
 0x119   :  { %v1057_v21 = vrot.slane %v752_v20, 4 }
 0x11a   :  { %v1051_v22 = vmax.f32 %v750_v18, %v1050_v19 }
 0x11b   :  { %v1058_v23 = vmax.f32 %v752_v20, %v1057_v21  ;;  %v756_v24 = vpop.f32.mrb[2].mxu0 }
 0x11c   :  { %v1052_v25 = vrot.slane %v1051_v22, 2  ;;  %v847_v26 = vadd.f32 %v756_v24, %v750_v18  ;;  %v758_v27 = vpop.f32.mrb[3].mxu0 }
 0x11d   :  { %v1059_v28 = vrot.slane %v1058_v23, 2  ;;  %v854_v29 = vadd.f32 %v758_v27, %v752_v20 }
 0x11e   :  { %v848_v30 = vrot.slane %v847_v26, 4  ;;  %v1053_v33 = vmax.f32 %v1051_v22, %v1052_v25 }
 0x11f   :  { %v855_v31 = vrot.slane %v854_v29, 4  ;;  %v762_v32 = vpop.f32.mrb[4].mxu0  ;;  %v1060_v37 = vmax.f32 %v1058_v23, %v1059_v28 }
 0x120   :  { %v849_v34 = vadd.f32 %v848_v30, %v847_v26  ;;  %v1064_v35 = vrot.slane %v762_v32, 4  ;;  %v764_v36 = vpop.f32.mrb[5].mxu0  ;;  %v1054_v45 = vrot.slane %v1053_v33, 1 }
 0x121   :  { %v856_v38 = vadd.f32 %v855_v31, %v854_v29  ;;  %v1071_v39 = vrot.slane %v764_v36, 4  ;;  %v1061_v49 = vrot.slane %v1060_v37, 1 }
 0x122   :  { %v850_v40 = vrot.slane %v849_v34, 2  ;;  %v1065_v41 = vmax.f32 %v762_v32, %v1064_v35  ;;  %v1055_v59 = vmax.f32 %v1053_v33, %v1054_v45 }
 0x123   :  { %v857_v42 = vrot.slane %v856_v38, 2  ;;  %v1072_v43 = vmax.f32 %v764_v36, %v1071_v39  ;;  %v768_v44 = vpop.f32.mrb[6].mxu0  ;;  %v1062_v0 = vmax.f32 %v1060_v37, %v1061_v49 }
 0x124   :  { %v1066_v46 = vrot.slane %v1065_v41, 2  ;;  %v861_v47 = vadd.f32 %v768_v44, %v762_v32  ;;  %v770_v48 = vpop.f32.mrb[7].mxu0  ;;  %v851_v52 = vadd.f32 %v850_v40, %v849_v34 }
 0x125   :  { %v1073_v50 = vrot.slane %v1072_v43, 2  ;;  %v868_v51 = vadd.f32 %v770_v48, %v764_v36  ;;  %v858_v55 = vadd.f32 %v857_v42, %v856_v38 }
 0x126   :  { %v1067_v53 = vmax.f32 %v1065_v41, %v1066_v46  ;;  %v862_v54 = vrot.slane %v861_v47, 4  ;;  %v852_v4 = vrot.slane %v851_v52, 1 }
 0x127   :  { %v1074_v56 = vmax.f32 %v1072_v43, %v1073_v50  ;;  %v869_v57 = vrot.slane %v868_v51, 4  ;;  %v774_v58 = vpop.f32.mrb[8].mxu0  ;;  %v859_v8 = vrot.slane %v858_v55, 1 }
 0x128   :  { %v1068_v60 = vrot.slane %v1067_v53, 1  ;;  %v863_v61 = vadd.f32 %v862_v54, %v861_v47  ;;  %v1078_v62 = vrot.slane %v774_v58, 4  ;;  %v776_v63 = vpop.f32.mrb[9].mxu0  ;;  %v853_v22 = vadd.f32 %v852_v4, %v851_v52 }
 0x129   :  { %v1075_v1 = vrot.slane %v1074_v56, 1  ;;  %v870_v2 = vadd.f32 %v869_v57, %v868_v51  ;;  %v1085_v3 = vrot.slane %v776_v63, 4  ;;  %v860_v26 = vadd.f32 %v859_v8, %v858_v55 }
 0x12a   :  { %v1069_v5 = vmax.f32 %v1067_v53, %v1068_v60  ;;  %v864_v6 = vrot.slane %v863_v61, 2  ;;  %v1079_v7 = vmax.f32 %v774_v58, %v1078_v62 }
 0x12b   :  { %v1076_v9 = vmax.f32 %v1074_v56, %v1075_v1  ;;  %v871_v10 = vrot.slane %v870_v2, 2  ;;  %v1086_v11 = vmax.f32 %v776_v63, %v1085_v3  ;;  %v780_v12 = vpop.f32.mrb[10].mxu0 }
 0x12c   :  { %v1177_v13 = vsel %vm975_vm1, %v1069_v5, %v1055_v59  ;;  %v865_v14 = vadd.f32 %v864_v6, %v863_v61  ;;  %v1080_v15 = vrot.slane %v1079_v7, 2  ;;  %v875_v16 = vadd.f32 %v780_v12, %v774_v58  ;;  %v782_v17 = vpop.f32.mrb[11].mxu0 }
 0x12d   :  { %v1184_v18 = vsel %vm975_vm1, %v1076_v9, %v1062_v0  ;;  %v872_v19 = vadd.f32 %v871_v10, %v870_v2  ;;  %v1087_v20 = vrot.slane %v1086_v11, 2  ;;  %v882_v21 = vadd.f32 %v782_v17, %v776_v63 }
 0x12e   :  { %v866_v23 = vrot.slane %v865_v14, 1  ;;  %v1081_v24 = vmax.f32 %v1079_v7, %v1080_v15  ;;  %v876_v25 = vrot.slane %v875_v16, 4 }
 0x12f   :  { %v873_v27 = vrot.slane %v872_v19, 1  ;;  %v1088_v28 = vmax.f32 %v1086_v11, %v1087_v20  ;;  %v883_v29 = vrot.slane %v882_v21, 4  ;;  %v786_v30 = vpop.f32.mrb[12].mxu0 }
 0x130   :  { %v867_v31 = vadd.f32 %v866_v23, %v865_v14  ;;  %v1082_v32 = vrot.slane %v1081_v24, 1  ;;  %v877_v33 = vadd.f32 %v876_v25, %v875_v16  ;;  %v1092_v34 = vrot.slane %v786_v30, 4  ;;  %v788_v35 = vpop.f32.mrb[13].mxu0 }
 0x131   :  { %v874_v36 = vadd.f32 %v873_v27, %v872_v19  ;;  %v1089_v37 = vrot.slane %v1088_v28, 1  ;;  %v884_v38 = vadd.f32 %v883_v29, %v882_v21  ;;  %v1099_v39 = vrot.slane %v788_v35, 4 }
 0x132   :  { %v976_v40 = vsel %vm975_vm1, %v867_v31, %v853_v22  ;;  %v1083_v41 = vmax.f32 %v1081_v24, %v1082_v32  ;;  %v878_v42 = vrot.slane %v877_v33, 2  ;;  %v1093_v43 = vmax.f32 %v786_v30, %v1092_v34 }
 0x133   :  { %v989_v44 = vsel %vm975_vm1, %v874_v36, %v860_v26  ;;  %v1090_v45 = vmax.f32 %v1088_v28, %v1089_v37  ;;  %v885_v46 = vrot.slane %v884_v38, 2  ;;  %v1100_v47 = vmax.f32 %v788_v35, %v1099_v39  ;;  %v792_v48 = vpop.f32.mrb[14].mxu0 }
 0x134   :  { %v1178_v49 = vsel %vm977_vm2, %v1083_v41, %v1177_v13  ;;  %v879_v50 = vadd.f32 %v878_v42, %v877_v33  ;;  %v1094_v51 = vrot.slane %v1093_v43, 2  ;;  %v889_v52 = vadd.f32 %v792_v48, %v786_v30  ;;  %v794_v53 = vpop.f32.mrb[15].mxu0 }
 0x135   :  { %v886_v54 = vadd.f32 %v885_v46, %v884_v38  ;;  %v1101_v55 = vrot.slane %v1100_v47, 2  ;;  %v896_v56 = vadd.f32 %v794_v53, %v788_v35  ;;  %v1185_v57 = vsel %vm977_vm2, %v1090_v45, %v1184_v18 }
 0x136   :  { %v880_v58 = vrot.slane %v879_v50, 1  ;;  %v1095_v59 = vmax.f32 %v1093_v43, %v1094_v51  ;;  %v890_v60 = vrot.slane %v889_v52, 4 }
 0x137   :  { %v887_v61 = vrot.slane %v886_v54, 1  ;;  %v1102_v62 = vmax.f32 %v1100_v47, %v1101_v55  ;;  %v897_v63 = vrot.slane %v896_v56, 4  ;;  %v798_v0 = vpop.f32.mrb[16].mxu0 }
 0x138   :  { %v881_v1 = vadd.f32 %v880_v58, %v879_v50  ;;  %v1096_v2 = vrot.slane %v1095_v59, 1  ;;  %v891_v3 = vadd.f32 %v890_v60, %v889_v52  ;;  %v1106_v4 = vrot.slane %v798_v0, 4  ;;  %v800_v5 = vpop.f32.mrb[17].mxu0 }
 0x139   :  { %v888_v6 = vadd.f32 %v887_v61, %v886_v54  ;;  %v1103_v7 = vrot.slane %v1102_v62, 1  ;;  %v898_v8 = vadd.f32 %v897_v63, %v896_v56  ;;  %v1113_v9 = vrot.slane %v800_v5, 4 }
 0x13a   :  { %v978_v10 = vsel %vm977_vm2, %v881_v1, %v976_v40  ;;  %v1097_v11 = vmax.f32 %v1095_v59, %v1096_v2  ;;  %v892_v12 = vrot.slane %v891_v3, 2  ;;  %v1107_v13 = vmax.f32 %v798_v0, %v1106_v4 }
 0x13b   :  { %v990_v14 = vsel %vm977_vm2, %v888_v6, %v989_v44  ;;  %v1104_v15 = vmax.f32 %v1102_v62, %v1103_v7  ;;  %v899_v16 = vrot.slane %v898_v8, 2  ;;  %v1114_v17 = vmax.f32 %v800_v5, %v1113_v9  ;;  %v804_v18 = vpop.f32.mrb[18].mxu0 }
 0x13c   :  { %v893_v19 = vadd.f32 %v892_v12, %v891_v3  ;;  %v1108_v20 = vrot.slane %v1107_v13, 2  ;;  %v903_v21 = vadd.f32 %v804_v18, %v798_v0  ;;  %v806_v22 = vpop.f32.mrb[19].mxu0  ;;  %v1179_v23 = vsel %vm979_vm3, %v1097_v11, %v1178_v49 }
 0x13d   :  { %v900_v24 = vadd.f32 %v899_v16, %v898_v8  ;;  %v1115_v25 = vrot.slane %v1114_v17, 2  ;;  %v910_v26 = vadd.f32 %v806_v22, %v800_v5  ;;  %v1186_v27 = vsel %vm979_vm3, %v1104_v15, %v1185_v57 }
 0x13e   :  { %v894_v28 = vrot.slane %v893_v19, 1  ;;  %v1109_v29 = vmax.f32 %v1107_v13, %v1108_v20  ;;  %v904_v30 = vrot.slane %v903_v21, 4 }
 0x13f   :  { %v901_v31 = vrot.slane %v900_v24, 1  ;;  %v1116_v32 = vmax.f32 %v1114_v17, %v1115_v25  ;;  %v911_v33 = vrot.slane %v910_v26, 4  ;;  %v810_v34 = vpop.f32.mrb[20].mxu0 }
 0x140   :  { %v895_v35 = vadd.f32 %v894_v28, %v893_v19  ;;  %v1110_v36 = vrot.slane %v1109_v29, 1  ;;  %v905_v37 = vadd.f32 %v904_v30, %v903_v21  ;;  %v1120_v38 = vrot.slane %v810_v34, 4  ;;  %v812_v39 = vpop.f32.mrb[21].mxu0 }
 0x141   :  { %v902_v40 = vadd.f32 %v901_v31, %v900_v24  ;;  %v1117_v41 = vrot.slane %v1116_v32, 1  ;;  %v912_v42 = vadd.f32 %v911_v33, %v910_v26  ;;  %v1127_v43 = vrot.slane %v812_v39, 4 }
 0x142   :  { %v980_v44 = vsel %vm979_vm3, %v895_v35, %v978_v10  ;;  %v1111_v45 = vmax.f32 %v1109_v29, %v1110_v36  ;;  %v906_v46 = vrot.slane %v905_v37, 2  ;;  %v1121_v47 = vmax.f32 %v810_v34, %v1120_v38 }
 0x143   :  { %v991_v48 = vsel %vm979_vm3, %v902_v40, %v990_v14  ;;  %v1118_v49 = vmax.f32 %v1116_v32, %v1117_v41  ;;  %v913_v50 = vrot.slane %v912_v42, 2  ;;  %v1128_v51 = vmax.f32 %v812_v39, %v1127_v43  ;;  %v816_v52 = vpop.f32.mrb[22].mxu0 }
 0x144   :  { %v907_v53 = vadd.f32 %v906_v46, %v905_v37  ;;  %v1122_v54 = vrot.slane %v1121_v47, 2  ;;  %v917_v55 = vadd.f32 %v816_v52, %v810_v34  ;;  %v818_v56 = vpop.f32.mrb[23].mxu0  ;;  %v1180_v57 = vsel %vm981_vm4, %v1111_v45, %v1179_v23 }
 0x145   :  { %v914_v58 = vadd.f32 %v913_v50, %v912_v42  ;;  %v1129_v59 = vrot.slane %v1128_v51, 2  ;;  %v924_v60 = vadd.f32 %v818_v56, %v812_v39  ;;  %v1187_v61 = vsel %vm981_vm4, %v1118_v49, %v1186_v27 }
 0x146   :  { %v908_v62 = vrot.slane %v907_v53, 1  ;;  %v1123_v63 = vmax.f32 %v1121_v47, %v1122_v54  ;;  %v918_v0 = vrot.slane %v917_v55, 4 }
 0x147   :  { %v915_v1 = vrot.slane %v914_v58, 1  ;;  %v1130_v2 = vmax.f32 %v1128_v51, %v1129_v59  ;;  %v925_v3 = vrot.slane %v924_v60, 4  ;;  %v822_v4 = vpop.f32.mrb[24].mxu0 }
 0x148   :  { %v909_v5 = vadd.f32 %v908_v62, %v907_v53  ;;  %v1124_v6 = vrot.slane %v1123_v63, 1  ;;  %v919_v7 = vadd.f32 %v918_v0, %v917_v55  ;;  %v1134_v8 = vrot.slane %v822_v4, 4  ;;  %v824_v9 = vpop.f32.mrb[25].mxu0 }
 0x149   :  { %v916_v10 = vadd.f32 %v915_v1, %v914_v58  ;;  %v1131_v11 = vrot.slane %v1130_v2, 1  ;;  %v926_v12 = vadd.f32 %v925_v3, %v924_v60  ;;  %v1141_v13 = vrot.slane %v824_v9, 4 }
 0x14a   :  { %v1125_v14 = vmax.f32 %v1123_v63, %v1124_v6  ;;  %v920_v15 = vrot.slane %v919_v7, 2  ;;  %v1135_v16 = vmax.f32 %v822_v4, %v1134_v8  ;;  %v982_v17 = vsel %vm981_vm4, %v909_v5, %v980_v44 }
 0x14b   :  { %v1132_v18 = vmax.f32 %v1130_v2, %v1131_v11  ;;  %v927_v19 = vrot.slane %v926_v12, 2  ;;  %v1142_v20 = vmax.f32 %v824_v9, %v1141_v13  ;;  %v828_v21 = vpop.f32.mrb[26].mxu0  ;;  %v992_v22 = vsel %vm981_vm4, %v916_v10, %v991_v48 }
 0x14c   :  { %v921_v23 = vadd.f32 %v920_v15, %v919_v7  ;;  %v1136_v24 = vrot.slane %v1135_v16, 2  ;;  %v931_v25 = vadd.f32 %v828_v21, %v822_v4  ;;  %v830_v26 = vpop.f32.mrb[27].mxu0  ;;  %v1181_v27 = vsel %vm983_vm5, %v1125_v14, %v1180_v57  ;;  %v1236_v14 = vld [vmem:[#allocation9 + $0x100] sm:$0xff]  ;;  %v1237_v15 = vld [vmem:[#allocation9 + $0x108] sm:$0xff] }
 0x14d   :  { %v928_v28 = vadd.f32 %v927_v19, %v926_v12  ;;  %v1143_v29 = vrot.slane %v1142_v20, 2  ;;  %v938_v30 = vadd.f32 %v830_v26, %v824_v9  ;;  %v1188_v31 = vsel %vm983_vm5, %v1132_v18, %v1187_v61  ;;  %v1254_v18 = vld [vmem:[#allocation9 + $0x190] sm:$0xff]  ;;  %v1255_v19 = vld [vmem:[#allocation9 + $0x198] sm:$0xff] }
 0x14e   :  { %v922_v32 = vrot.slane %v921_v23, 1  ;;  %v1137_v33 = vmax.f32 %v1135_v16, %v1136_v24  ;;  %v932_v34 = vrot.slane %v931_v25, 4  ;;  %v1571_v26 = vpack.c.bf16 %v1237_v15, %v1236_v14 }
 0x14f   :  { %v929_v35 = vrot.slane %v928_v28, 1  ;;  %v1144_v36 = vmax.f32 %v1142_v20, %v1143_v29  ;;  %v939_v37 = vrot.slane %v938_v30, 4  ;;  %v834_v38 = vpop.f32.mrb[28].mxu0  ;;  %v1573_v29 = vpack.c.bf16 %v1255_v19, %v1254_v18  ;;  %v1426_v19 = vld [vmem:[%s1852_s3] ss:$0 sm:$0xff] }
 0x150   :  { %v923_v39 = vadd.f32 %v922_v32, %v921_v23  ;;  %v1138_v40 = vrot.slane %v1137_v33, 1  ;;  %v933_v41 = vadd.f32 %v932_v34, %v931_v25  ;;  %v1148_v42 = vrot.slane %v834_v38, 4  ;;  %v836_v43 = vpop.f32.mrb[29].mxu0  ;;  %v1257_v34 = vld [vmem:[#allocation9 + $0x1a8] sm:$0xff] }
 0x151   :  { %v930_v44 = vadd.f32 %v929_v35, %v928_v28  ;;  %v1145_v45 = vrot.slane %v1144_v36, 1  ;;  %v940_v46 = vadd.f32 %v939_v37, %v938_v30  ;;  %v1155_v47 = vrot.slane %v836_v43, 4  ;;  %v1238_v30 = vld [vmem:[#allocation9 + $0x110] sm:$0xff] }
 0x152   :  { %v1139_v48 = vmax.f32 %v1137_v33, %v1138_v40  ;;  %v934_v49 = vrot.slane %v933_v41, 2  ;;  %v1149_v50 = vmax.f32 %v834_v38, %v1148_v42  ;;  %v984_v51 = vsel %vm983_vm5, %v923_v39, %v982_v17  ;;  %v1256_v33 = vld [vmem:[#allocation9 + $0x1a0] sm:$0xff]  ;;  %v1258_v42 = vld [vmem:[#allocation9 + $0x1b0] sm:$0xff] }
 0x153   :  { %v941_v52 = vrot.slane %v940_v46, 2  ;;  %v1156_v53 = vmax.f32 %v836_v43, %v1155_v47  ;;  %v840_v54 = vpop.f32.mrb[30].mxu0  ;;  %v1146_v55 = vmax.f32 %v1144_v36, %v1145_v45  ;;  %v993_v56 = vsel %vm983_vm5, %v930_v44, %v992_v22  ;;  %v1240_v40 = vld [vmem:[#allocation9 + $0x120] sm:$0xff] }
 0x154   :  { %v935_v57 = vadd.f32 %v934_v49, %v933_v41  ;;  %v1150_v58 = vrot.slane %v1149_v50, 2  ;;  %v945_v59 = vadd.f32 %v840_v54, %v834_v38  ;;  %v842_v60 = vpop.f32.mrb[31].mxu0  ;;  %v1182_v61 = vsel %vm985_vm6, %v1139_v48, %v1181_v27  ;;  %v1241_v41 = vld [vmem:[#allocation9 + $0x128] sm:$0xff]  ;;  %v1242_v49 = vld [vmem:[#allocation9 + $0x130] sm:$0xff] }
 0x155   :  { %v942_v62 = vadd.f32 %v941_v52, %v940_v46  ;;  %v1157_v63 = vrot.slane %v1156_v53, 2  ;;  %v952_v0 = vadd.f32 %v842_v60, %v836_v43  ;;  %v1189_v1 = vsel %vm985_vm6, %v1146_v55, %v1188_v31  ;;  %v1239_v31 = vld [vmem:[#allocation9 + $0x118] sm:$0xff]  ;;  %v1261_v52 = vld [vmem:[#allocation9 + $0x1c8] sm:$0xff]  ;;  %v1244_v55 = vld [vmem:[#allocation9 + $0x140] sm:$0xff] }
 0x156   :  { %v936_v2 = vrot.slane %v935_v57, 1  ;;  %v1151_v3 = vmax.f32 %v1149_v50, %v1150_v58  ;;  %v946_v4 = vrot.slane %v945_v59, 4  ;;  %v1575_v37 = vpack.c.bf16 %v1239_v31, %v1238_v30  ;;  %v1259_v43 = vld [vmem:[#allocation9 + $0x1b8] sm:$0xff] }
 0x157   :  { %v943_v5 = vrot.slane %v942_v62, 1  ;;  %v1158_v6 = vmax.f32 %v1156_v53, %v1157_v63  ;;  %v953_v7 = vrot.slane %v952_v0, 4  ;;  %v1577_v39 = vpack.c.bf16 %v1257_v34, %v1256_v33  ;;  %v1243_v50 = vld [vmem:[#allocation9 + $0x138] sm:$0xff]  ;;  %v1264_v63 = vld [vmem:[#allocation9 + $0x1e0] sm:$0xff] }
 0x158   :  { %v937_v8 = vadd.f32 %v936_v2, %v935_v57  ;;  %v1152_v9 = vrot.slane %v1151_v3, 1  ;;  %v947_v10 = vadd.f32 %v946_v4, %v945_v59  ;;  %v1579_v47 = vpack.c.bf16 %v1241_v41, %v1240_v40  ;;  %v1262_v57 = vld [vmem:[#allocation9 + $0x1d0] sm:$0xff]  ;;  %v1263_v58 = vld [vmem:[#allocation9 + $0x1d8] sm:$0xff]  ;;  %v1249_v4 = vld [vmem:[#allocation9 + $0x168] sm:$0xff] }
 0x159   :  { %v944_v11 = vadd.f32 %v943_v5, %v942_v62  ;;  %v954_v12 = vadd.f32 %v953_v7, %v952_v0  ;;  %v1159_v13 = vrot.slane %v1158_v6, 1  ;;  %v1581_v48 = vpack.c.bf16 %v1259_v43, %v1258_v42  ;;  %v1247_v62 = vld [vmem:[#allocation9 + $0x158] sm:$0xff]  ;;  %v1265_v0 = vld [vmem:[#allocation9 + $0x1e8] sm:$0xff]  ;;  %v1266_v5 = vld [vmem:[#allocation9 + $0x1f0] sm:$0xff] }
 0x15a   :  { %v948_v16 = vrot.slane %v947_v10, 2  ;;  %v1153_v17 = vmax.f32 %v1151_v3, %v1152_v9  ;;  %v986_v20 = vsel %vm985_vm6, %v937_v8, %v984_v51  ;;  %v1260_v51 = vld [vmem:[#allocation9 + $0x1c0] sm:$0xff]  ;;  %v1583_v53 = vpack.c.bf16 %v1243_v50, %v1242_v49  ;;  %v1250_v9 = vld [vmem:[#allocation9 + $0x170] sm:$0xff] }
 0x15b   :  { %v955_v21 = vrot.slane %v954_v12, 2  ;;  %v1160_v22 = vmax.f32 %v1158_v6, %v1159_v13  ;;  %v994_v23 = vsel %vm985_vm6, %v944_v11, %v993_v56  ;;  %v1585_v54 = vpack.c.bf16 %v1261_v52, %v1260_v51  ;;  %v1245_v56 = vld [vmem:[#allocation9 + $0x148] sm:$0xff]  ;;  %v1248_v3 = vld [vmem:[#allocation9 + $0x160] sm:$0xff]  ;;  %v1267_v6 = vld [vmem:[#allocation9 + $0x1f8] sm:$0xff] }
 0x15c   :  { %v949_v24 = vadd.f32 %v948_v16, %v947_v10  ;;  %v1183_v25 = vsel %vm987_vm7, %v1153_v17, %v1182_v61  ;;  %v1587_v59 = vpack.c.bf16 %v1245_v56, %v1244_v55  ;;  %v1589_v60 = vpack.c.bf16 %v1263_v58, %v1262_v57  ;;  %v1246_v61 = vld [vmem:[#allocation9 + $0x150] sm:$0xff]  ;;  %v1251_v10 = vld [vmem:[#allocation9 + $0x178] sm:$0xff] }
 0x15d   :  { %v956_v27 = vadd.f32 %v955_v21, %v954_v12  ;;  %v1190_v28 = vsel %vm987_vm7, %v1160_v22, %v1189_v1  ;;  %v1591_v1 = vpack.c.bf16 %v1247_v62, %v1246_v61  ;;  %v1593_v2 = vpack.c.bf16 %v1265_v0, %v1264_v63 }
 0x15e   :  { %v950_v32 = vrot.slane %v949_v24, 1  ;;  %1332 = vmatprep.mubr.f32.mxu1 %v1190_v28  ;;  %v1595_v7 = vpack.c.bf16 %v1249_v4, %v1248_v3  ;;  %v1597_v8 = vpack.c.bf16 %v1267_v6, %v1266_v5  ;;  %v1599_v11 = vpack.c.bf16 %v1251_v10, %v1250_v9 }
 0x15f   :  { %v957_v35 = vrot.slane %v956_v27, 1  ;;  %1333 = vmatmul.mubr.f32.vlgmr.msra.gmra.mrb[0].mxu1 %v1183_v25 }
 0x160   :  { %v951_v36 = vadd.f32 %v950_v32, %v949_v24  ;;  %1572 = vmatpush3.bf16.msra.mxu1 %v1571_v26 }
 0x161   :  { %v958_v38 = vadd.f32 %v957_v35, %v956_v27  ;;  %1574 = vmatprep.subr.bf16.mxu1 %v1573_v29 }
 0x162   :  { %v988_v44 = vsel %vm987_vm7, %v951_v36, %v986_v20 }
 0x163   :  { %v995_v45 = vsel %vm987_vm7, %v958_v38, %v994_v23  ;;  %v1201_v12 = vmul.f32 0.125, %v988_v44 }
 0x164   :  { %1576 = vmatpush3.bf16.msra.mxu1 %v1575_v37  ;;  %v1202_v46 = vmul.f32 0.125, %v995_v45 }
 0x165   :  { %1578 = vmatprep.subr.bf16.mxu1 %v1577_v39 }
 0x166   :  { %1402 = vmatprep.mubr.f32.mxu1 %v1202_v46 }
 0x168   :  { %1580 = vmatpush3.bf16.msra.mxu1 %v1579_v47 }
 0x169   :  { %1582 = vmatprep.subr.bf16.mxu1 %v1581_v48 }
 0x16c   :  { %1584 = vmatpush3.bf16.msra.mxu1 %v1583_v53 }
 0x16d   :  { %1586 = vmatprep.subr.bf16.mxu1 %v1585_v54 }
 0x170   :  { %1588 = vmatpush3.bf16.msra.mxu1 %v1587_v59 }
 0x171   :  { %1590 = vmatprep.subr.bf16.mxu1 %v1589_v60 }
 0x174   :  { %1592 = vmatpush3.bf16.msra.mxu1 %v1591_v1 }
 0x175   :  { %1594 = vmatprep.subr.bf16.mxu1 %v1593_v2 }
 0x178   :  { %1596 = vmatpush3.bf16.msra.mxu1 %v1595_v7 }
 0x179   :  { %1598 = vmatprep.subr.bf16.mxu1 %v1597_v8 }
 0x17c   :  { %1600 = vmatpush3.bf16.msra.mxu1 %v1599_v11 }
 0x17f   :  { %1403 = vmatmul.mubr.f32.vlgmr.msra.gmra.mrb[2].mxu1 %v1201_v12 }
 0x232   :  { %v1491_v13 = vpop.f32.mrb[0].mxu1 }
 0x233   :  { %v1492_v14 = vpop.f32.mrb[1].mxu1 }
 0x234   :  { %v1493_v15 = vadd.f32 %v1492_v14, %v1491_v13 }
 0x252   :  { %v1526_v16 = vpop.f32.mrb[2].mxu1 }
 0x253   :  { %v1527_v17 = vpop.f32.mrb[3].mxu1 }
 0x254   :  { %v1528_v18 = vadd.f32 %v1527_v17, %v1526_v16 }
 0x256   :  { %v1405_v20 = vadd.f32 %v1528_v18, %v1493_v15 }
 0x258   :  { %v1408_v21 = vadd.f32 %v1426_v19, %v1405_v20 }
 0x25a   :  { %1409 = vst [vmem:[#allocation10] sm:$0xff] %v1408_v21 }
 0x25b   :  { %1687 = shalt.err (!%p1684_p0)
}
 0x25c   :  { %s1688_s7 = scalar_lea.hbm %s1853_s4, 128 }
 0x25d   :  { %p1689_p1 = scmp.ne.s32.totalorder %s1853_s4, %s1688_s7  ;;  %p1692_p2 = scmp.lt.u32.totalorder %s1688_s7, %s1853_s4 }
 0x25f   :  { %p1694_p3 = pnand %p1692_p2, %p1689_p1 }
 0x261   :  { %1697 = shalt.err (!%p1694_p3)
}
 0x262   :  { %1419 = dma.vmem_to_hbm [thread:$0]  %s1417_s29, 128, %s1853_s4, [#allocation6]  }
 0x263   :  { %1702 = dma.done.wait [#allocation6], 128  }
 0x264   :  { %1703 = vsyncadd [#allocation6], 4294967168 }
 0x265   :  { %1423 = vsyncpa [#allocation5], 1 }
 0x266   :  { %1424 = vsyncpa [#allocation8], 1 }
 0x267   :  { %1425 = vsyncpa [#allocation6], 1 }

</bundles_post_ra>
